<compile_context>
chip_gen: v7x
topology: tpu7x:2x2x1
jax: 0.10.0
libtpu: 0.0.40
codegen_flags: <defaults>
</compile_context>

<pallas_src>
import functools

import jax
import jax.numpy as jnp
from jax.experimental import pallas as pl
from jax.experimental.pallas import tpu as pltpu

EMB = 64          # embedding_size of the PyTorch module
LN_EPS = 1e-5


def _round_up(x, m):
    return (x + m - 1) // m * m


def _sublane(dtype):
    itemsize = jnp.dtype(dtype).itemsize
    if itemsize == 1:
        return 32
    if itemsize == 2:
        return 16
    return 8


def _projector_kernel(x_ref, w1_ref, w2_ref, r_ref, vec_ref, o_ref):
    # x_ref: (TB, 128) tile; each 128-lane row holds TWO logical 64-wide rows.
    # All packed weights are block-diagonal so the two halves never mix.
    # vec_ref rows: 0 = b1, 1 = b2, 2 = gamma, 3 = beta (each tiled to 128 lanes).
    f32 = jnp.float32
    x = x_ref[...].astype(f32)

    # Linear 1 (per half): (TB,128) @ blockdiag(W1,W1) + [b1|b1]
    h = jnp.dot(x, w1_ref[...], preferred_element_type=f32) + vec_ref[0:1, :]

    # LayerNorm stats per 64-lane half via block-diagonal averaging matmul.
    # One-pass stats: var = E[h^2] - mean^2 (two independent MXU reductions).
    r = r_ref[...]
    mean = jnp.dot(h, r, preferred_element_type=f32)
    msq = jnp.dot(h * h, r, preferred_element_type=f32)
    var = msq - mean * mean

    # Fused affine: scale = gamma * rsqrt(var + eps);  hn = (h - mean)*scale + beta
    scale = vec_ref[2:3, :] * jax.lax.rsqrt(var + LN_EPS)   # rsqrt -> EUP slot
    hn = (h - mean) * scale + vec_ref[3:4, :]
    hn = jnp.maximum(hn, 0.0)                                # ReLU

    # Linear 2 (per half) + residual (f32); single downcast at the store.
    out = jnp.dot(hn, w2_ref[...], preferred_element_type=f32) \
        + vec_ref[1:2, :] + x
    o_ref[...] = out.astype(o_ref.dtype)


@functools.partial(jax.jit, static_argnames=("block_rows", "out_dtype"))
def projector_forward(x, w1, b1, w2, b2, gamma, beta, *,
                      block_rows=None, out_dtype=None):
    """x: (B, 64).  w1/w2: (in, out) = (64, 64) (pre-transposed from PyTorch).

    Math is f32 in-kernel regardless of I/O dtype.  Pass a bf16 `x` to halve
    HBM traffic (the residual then adds the bf16-rounded x).  `out_dtype`
    defaults to x.dtype.  `block_rows` overrides the auto tile (packed rows).
    """
    B, D = x.shape
    assert D == EMB
    out_dtype = x.dtype if out_dtype is None else out_dtype
    f32 = jnp.float32

    # ---- pack parameters (tiny: three 128x128 mats + one (8,128) vec slab) ---
    eye2 = jnp.eye(2, dtype=f32)
    w1p = jnp.kron(eye2, w1.astype(f32))                      # (128,128) blockdiag
    w2p = jnp.kron(eye2, w2.astype(f32))
    rmat = jnp.kron(eye2, jnp.full((D, D), 1.0 / D, f32))     # per-half averaging

    def pack_vec(v):
        return jnp.tile(v.reshape(-1).astype(f32), 2)         # (128,)
    vecs = jnp.stack([pack_vec(b1), pack_vec(b2), pack_vec(gamma), pack_vec(beta)]
                     + [jnp.zeros((2 * D,), f32)] * 4)        # (8,128), sublane-aligned

    # ---- lane-dense packing of x: 2 logical rows per 128-lane row ------------
    xp = x
    if B % 2:                                 # pad a single row only when B odd
        xp = jnp.pad(xp, ((0, 1), (0, 0)))
    pb = xp.shape[0] // 2
    xp = xp.reshape(pb, 2 * D)                # contiguous reshape: no data movement

    # ---- generation-safe tile sizing -----------------------------------------
    in_bytes = jnp.dtype(x.dtype).itemsize
    o_bytes = jnp.dtype(out_dtype).itemsize
    sub = max(_sublane(x.dtype), _sublane(out_dtype))
    if block_rows is None:
        # ~6 live (tile,128) f32 temporaries in the body + double-buffered
        # in/out pipeline blocks.  ~28 MiB activation budget keeps the kernel
        # under the 40 MiB VMEM scope below (safe on v7x's 64 MiB physical
        # VMEM; large headroom on v5e/v6e's 128 MiB).
        per_row = 6 * (2 * D) * 4 + 2 * (2 * D) * (in_bytes + o_bytes)
        block_rows = (28 * 1024 * 1024) // per_row
    # Keep >=4 grid steps when the batch allows it (v7x megacore sharding +
    # per-core pipelining); zero cost elsewhere.
    tile = min(block_rows, _round_up(pl.cdiv(pb, 4), sub))
    tile = max(sub, _round_up(tile, sub))
    grid = (pl.cdiv(pb, tile),)               # trailing partial block handled by Pallas

    row_spec = pl.BlockSpec((tile, 2 * D), lambda i: (i, 0))
    mat_spec = pl.BlockSpec((2 * D, 2 * D), lambda i: (0, 0))
    vec_spec = pl.BlockSpec((8, 2 * D), lambda i: (0, 0))

    out_pack = pl.pallas_call(
        _projector_kernel,
        out_shape=jax.ShapeDtypeStruct((pb, 2 * D), out_dtype),
        grid_spec=pltpu.PrefetchScalarGridSpec(
            num_scalar_prefetch=0,
            grid=grid,
            in_specs=[row_spec, mat_spec, mat_spec, mat_spec, vec_spec],
            out_specs=row_spec,
        ),
        compiler_params=pltpu.CompilerParams(
            dimension_semantics=("parallel",),
            vmem_limit_bytes=40 * 1024 * 1024,
        ),
    )(xp, w1p, w2p, rmat, vecs)

    # ---- unpack: (pb,128) -> (2*pb,64); drop the single pad row if B was odd -
    out = out_pack.reshape(2 * pb, D)
    if 2 * pb != B:
        out = out[:B]
    return out


def init_params(key, d=EMB, dtype=jnp.float32):
    """Synthetic init mimicking nn.Linear (uniform +-1/sqrt(fan_in)) and
    nn.LayerNorm (gamma=1, beta=0).  PyTorch Linear stores W as (out, in);
    we pre-transpose to (in, out)."""
    k1, k2, k3, k4 = jax.random.split(key, 4)
    bound = 1.0 / (d ** 0.5)
    w1 = jax.random.uniform(k1, (d, d), dtype, -bound, bound).T
    b1 = jax.random.uniform(k2, (1, d), dtype, -bound, bound)
    w2 = jax.random.uniform(k3, (d, d), dtype, -bound, bound).T
    b2 = jax.random.uniform(k4, (1, d), dtype, -bound, bound)
    gamma = jnp.ones((1, d), dtype)
    beta = jnp.zeros((1, d), dtype)
    return w1, b1, w2, b2, gamma, beta


def reference_forward(x, w1, b1, w2, b2, gamma, beta):
    h = x @ w1 + b1
    mean = jnp.mean(h, axis=-1, keepdims=True)
    var = jnp.mean((h - mean) ** 2, axis=-1, keepdims=True)
    hn = (h - mean) / jnp.sqrt(var + LN_EPS) * gamma + beta
    hn = jnp.maximum(hn, 0.0)
    return hn @ w2 + b2 + x


if __name__ == "__main__":
    key = jax.random.PRNGKey(0)
    k_p, k1, k2 = jax.random.split(key, 3)
    params = init_params(k_p)

    # --- small batch, f32 I/O (tight check vs reference) ----------------------
    B = 8
    x = jax.random.normal(k1, (B, EMB), jnp.float32)
    out = projector_forward(x, *params)
    jax.block_until_ready(out)
    ref = reference_forward(x, *params)
    assert out.shape == (B, EMB) and out.dtype == jnp.float32
    assert jnp.allclose(out, ref, atol=2e-4, rtol=2e-4), "f32 mismatch vs reference"

    # --- odd batch: pad path + multi-step grid + partial trailing block -------
    B2 = 301
    x2 = jax.random.normal(k2, (B2, EMB), jnp.float32)
    out2 = projector_forward(x2, *params)
    jax.block_until_ready(out2)
    ref2 = reference_forward(x2, *params)
    assert out2.shape == (B2, EMB)
    assert jnp.allclose(out2, ref2, atol=2e-4, rtol=2e-4), "tail mismatch vs reference"

    # --- bf16 I/O path (caller supplies bf16; math stays f32 in-kernel) -------
    x3 = x2[:300].astype(jnp.bfloat16)
    out3 = projector_forward(x3, *params)
    jax.block_until_ready(out3)
    ref3 = reference_forward(x3.astype(jnp.float32), *params)
    assert out3.shape == (300, EMB) and out3.dtype == jnp.bfloat16
    assert jnp.allclose(out3.astype(jnp.float32), ref3, atol=0.1, rtol=0.05), \
        "bf16 mismatch vs reference"

    print("KERNEL_OK")
</pallas_src>

<mosaic_0001>
module attributes {stable_mosaic.version = 11 : i64} {
  func.func @_projector_kernel(%arg0: i32, %arg1: memref<8x128xf32, #tpu.memory_space<vmem>>, %arg2: memref<128x128xf32, #tpu.memory_space<vmem>>, %arg3: memref<128x128xf32, #tpu.memory_space<vmem>>, %arg4: memref<128x128xf32, #tpu.memory_space<vmem>>, %arg5: memref<8x128xf32, #tpu.memory_space<vmem>>, %arg6: memref<8x128xf32, #tpu.memory_space<vmem>>) attributes {dimension_semantics = [#tpu.dimension_semantics<parallel>], iteration_bounds = array<i64: 1>, scalar_prefetch = 0 : i64, scratch_operands = 0 : i64, tpu.core_type = #tpu.core_type<tc>, window_params = [{transform_indices = @transform_0, window_bounds = array<i64: 8, 128>}, {pipeline_mode = #tpu.pipeline_mode<synchronous>, transform_indices = @transform_1, window_bounds = array<i64: 128, 128>}, {pipeline_mode = #tpu.pipeline_mode<synchronous>, transform_indices = @transform_2, window_bounds = array<i64: 128, 128>}, {pipeline_mode = #tpu.pipeline_mode<synchronous>, transform_indices = @transform_3, window_bounds = array<i64: 128, 128>}, {pipeline_mode = #tpu.pipeline_mode<synchronous>, transform_indices = @transform_4, window_bounds = array<i64: 8, 128>}, {transform_indices = @transform_5, window_bounds = array<i64: 8, 128>}]} {
    %c0 = arith.constant 0 : index
    %c0_0 = arith.constant 0 : index
    %0 = vector.load %arg1[%c0, %c0_0] : memref<8x128xf32, #tpu.memory_space<vmem>>, vector<8x128xf32>
    %c0_1 = arith.constant 0 : index
    %c0_2 = arith.constant 0 : index
    %1 = vector.load %arg2[%c0_1, %c0_2] : memref<128x128xf32, #tpu.memory_space<vmem>>, vector<128x128xf32>
    %cst = arith.constant dense<0.000000e+00> : vector<8x128xf32>
    %2 = tpu.matmul %0, %1, %cst {dimension_numbers = #tpu.dot_dimension_numbers<[1], [0], [0], [1], [0, 0, 1, 1], [], []>} : vector<8x128xf32>, vector<128x128xf32>, vector<8x128xf32> -> vector<8x128xf32>
    %c0_3 = arith.constant 0 : index
    %c0_4 = arith.constant 0 : index
    %3 = vector.load %arg5[%c0_3, %c0_4] : memref<8x128xf32, #tpu.memory_space<vmem>>, vector<1x128xf32>
    %4 = vector.broadcast %3 : vector<1x128xf32> to vector<8x128xf32>
    %5 = arith.addf %2, %4 : vector<8x128xf32>
    %c0_5 = arith.constant 0 : index
    %c0_6 = arith.constant 0 : index
    %6 = vector.load %arg4[%c0_5, %c0_6] : memref<128x128xf32, #tpu.memory_space<vmem>>, vector<128x128xf32>
    %cst_7 = arith.constant dense<0.000000e+00> : vector<8x128xf32>
    %7 = tpu.matmul %5, %6, %cst_7 {dimension_numbers = #tpu.dot_dimension_numbers<[1], [0], [0], [1], [0, 0, 1, 1], [], []>} : vector<8x128xf32>, vector<128x128xf32>, vector<8x128xf32> -> vector<8x128xf32>
    %8 = arith.mulf %5, %5 : vector<8x128xf32>
    %cst_8 = arith.constant dense<0.000000e+00> : vector<8x128xf32>
    %9 = tpu.matmul %8, %6, %cst_8 {dimension_numbers = #tpu.dot_dimension_numbers<[1], [0], [0], [1], [0, 0, 1, 1], [], []>} : vector<8x128xf32>, vector<128x128xf32>, vector<8x128xf32> -> vector<8x128xf32>
    %10 = arith.mulf %7, %7 : vector<8x128xf32>
    %11 = arith.subf %9, %10 : vector<8x128xf32>
    %c2 = arith.constant 2 : index
    %c0_9 = arith.constant 0 : index
    %12 = vector.load %arg5[%c2, %c0_9] : memref<8x128xf32, #tpu.memory_space<vmem>>, vector<1x128xf32>
    %cst_10 = arith.constant 9.99999974E-6 : f32
    %13 = vector.broadcast %cst_10 : f32 to vector<8x128xf32>
    %14 = arith.addf %11, %13 : vector<8x128xf32>
    %15 = math.rsqrt %14 : vector<8x128xf32>
    %16 = vector.broadcast %12 : vector<1x128xf32> to vector<8x128xf32>
    %17 = arith.mulf %16, %15 : vector<8x128xf32>
    %18 = arith.subf %5, %7 : vector<8x128xf32>
    %19 = arith.mulf %18, %17 : vector<8x128xf32>
    %c3 = arith.constant 3 : index
    %c0_11 = arith.constant 0 : index
    %20 = vector.load %arg5[%c3, %c0_11] : memref<8x128xf32, #tpu.memory_space<vmem>>, vector<1x128xf32>
    %21 = vector.broadcast %20 : vector<1x128xf32> to vector<8x128xf32>
    %22 = arith.addf %19, %21 : vector<8x128xf32>
    %cst_12 = arith.constant 0.000000e+00 : f32
    %23 = vector.broadcast %cst_12 : f32 to vector<8x128xf32>
    %24 = arith.maximumf %22, %23 : vector<8x128xf32>
    %c0_13 = arith.constant 0 : index
    %c0_14 = arith.constant 0 : index
    %25 = vector.load %arg3[%c0_13, %c0_14] : memref<128x128xf32, #tpu.memory_space<vmem>>, vector<128x128xf32>
    %cst_15 = arith.constant dense<0.000000e+00> : vector<8x128xf32>
    %26 = tpu.matmul %24, %25, %cst_15 {dimension_numbers = #tpu.dot_dimension_numbers<[1], [0], [0], [1], [0, 0, 1, 1], [], []>} : vector<8x128xf32>, vector<128x128xf32>, vector<8x128xf32> -> vector<8x128xf32>
    %c1 = arith.constant 1 : index
    %c0_16 = arith.constant 0 : index
    %27 = vector.load %arg5[%c1, %c0_16] : memref<8x128xf32, #tpu.memory_space<vmem>>, vector<1x128xf32>
    %28 = vector.broadcast %27 : vector<1x128xf32> to vector<8x128xf32>
    %29 = arith.addf %26, %28 : vector<8x128xf32>
    %30 = arith.addf %29, %0 : vector<8x128xf32>
    %c0_17 = arith.constant 0 : index
    %c0_18 = arith.constant 0 : index
    %31 = vector.load %arg6[%c0_17, %c0_18] : memref<8x128xf32, #tpu.memory_space<vmem>>, vector<8x128xf32>
    tpu.vector_store %arg6[%c0_17, %c0_18], %30 {strides = array<i32>} : memref<8x128xf32, #tpu.memory_space<vmem>>, vector<8x128xf32>,
    return
  }
  func.func @transform_0(%arg0: i32) -> (i32, i32) {
    %c0_i32 = arith.constant 0 : i32
    %c0_i32_0 = arith.constant 0 : i32
    return %arg0, %c0_i32 : i32, i32
  }
  func.func @transform_1(%arg0: i32) -> (i32, i32) {
    %c0_i32 = arith.constant 0 : i32
    %c0_i32_0 = arith.constant 0 : i32
    %c0_i32_1 = arith.constant 0 : i32
    return %c0_i32, %c0_i32_0 : i32, i32
  }
  func.func @transform_2(%arg0: i32) -> (i32, i32) {
    %c0_i32 = arith.constant 0 : i32
    %c0_i32_0 = arith.constant 0 : i32
    %c0_i32_1 = arith.constant 0 : i32
    return %c0_i32, %c0_i32_0 : i32, i32
  }
  func.func @transform_3(%arg0: i32) -> (i32, i32) {
    %c0_i32 = arith.constant 0 : i32
    %c0_i32_0 = arith.constant 0 : i32
    %c0_i32_1 = arith.constant 0 : i32
    return %c0_i32, %c0_i32_0 : i32, i32
  }
  func.func @transform_4(%arg0: i32) -> (i32, i32) {
    %c0_i32 = arith.constant 0 : i32
    %c0_i32_0 = arith.constant 0 : i32
    %c0_i32_1 = arith.constant 0 : i32
    return %c0_i32, %c0_i32_0 : i32, i32
  }
  func.func @transform_5(%arg0: i32) -> (i32, i32) {
    %c0_i32 = arith.constant 0 : i32
    %c0_i32_0 = arith.constant 0 : i32
    return %arg0, %c0_i32 : i32, i32
  }
}

</mosaic_0001>

<bundles_post_ra>
// kernel: tile.18
= control target key start
LH: loop header
LB: loop body
LE: loop exit
PB: predicated region body
PF: predicated region fallthrough
CT: control target
= control target key end

     0   :  { %s22_s0 = inlined_call_operand.vmem [shape: f32[64], index: 0, kind: input, shape index: {}]   ;;  %s23_s1 = inlined_call_operand.vmem [shape: f32[2,64], index: 1, kind: output, shape index: {}]  }
   0x1   :  { %v4_v0 = vld [vmem:[%s22_s0] ss:$0 sm:$0xff] }
   0x2   :  { %5 = vst [vmem:[%s23_s1] sm:$0x3] %v4_v0 }

// kernel: tile.28
= control target key start
LH: loop header
LB: loop body
LE: loop exit
PB: predicated region body
PF: predicated region fallthrough
CT: control target
= control target key end

     0   :  { %vm7_vm0 = vcmask 523264   ;;  %vm13_vm1 = vcmask 1048064   ;;  %s39_s0 = inlined_call_operand.vmem [shape: f32[2,64], index: 0, kind: input, shape index: {}]   ;;  %s40_s1 = inlined_call_operand.vmem [shape: f32[1,128], index: 1, kind: output, shape index: {}]  }
   0x1   :  { %v4_v0 = vld [vmem:[%s39_s0] sm:$0x3]  ;;  %s22_s0 = smov 64  }
   0x2   :  { %5 = vst [vmem:[#allocation1] sm:$0x3] %v4_v0 }
   0x9   :  { %v10_v1 = vld [vmem:[#allocation1 + $0x1] sm:$0x1]   ;;  %v6_v2 = vld [vmem:[#allocation1] sm:$0x1]  }
   0xa   :  { %11 = vrot.lane.b32.xlu0 %v10_v1, %s22_s0  ;;  %8 = vst.msk [vmem:[#allocation0] sm:$0x1] %vm7_vm0, %v6_v2  }
  0x7c   :  { %v12_v3 = vpop.permute.xlu0 %11  }
  0x7d   :  { %14 = vst.msk [vmem:[#allocation0] sm:$0x1] %vm13_vm1, %v12_v3  }
  0x84   :  { %v18_v4 = vld [vmem:[#allocation0] sm:$0x1] }
  0x85   :  { %20 = vst [vmem:[%s40_s1] sm:$0x1] %v18_v4 }

// kernel: projector_forward.1
= control target key start
LH: loop header
LB: loop body
LE: loop exit
PB: predicated region body
PF: predicated region fallthrough
CT: control target
= control target key end

     0   :  { %v733_v3 = vmov 0.0|0.0   ;;  %vm734_vm0 = vmmov 0   ;;  %v735_v6 = vmov 0.0   ;;  %s972_s0 = inlined_call_operand.vmem [shape: f32[4,128], index: 0, kind: input, shape index: {}]   ;;  %s973_s1 = inlined_call_operand.vmem [shape: f32[128,128], index: 1, kind: input, shape index: {}]   ;;  %s974_s2 = inlined_call_operand.vmem [shape: f32[128,128], index: 2, kind: input, shape index: {}]   ;;  %s975_s3 = inlined_call_operand.vmem [shape: f32[128,128], index: 3, kind: input, shape index: {}]   ;;  %s976_s4 = inlined_call_operand.vmem [shape: f32[8,128], index: 4, kind: input, shape index: {}]   ;;  %s977_s5 = inlined_call_operand.vmem [shape: f32[4,128], index: 5, kind: output, shape index: {}]  }
   0x1   :  { %v21_v0 = vld [vmem:[%s973_s1] sm:$0xff]  ;;  %v22_v1 = vld [vmem:[%s973_s1 + $0x8] sm:$0xff]  ;;  %v23_v2 = vld [vmem:[%s973_s1 + $0x10] sm:$0xff]  ;;  %632 = vmatprep.subr.bf16.mxu0 %v733_v3  ;;  %524 = vmatprep.mubr.msk.f32.mxu0 %vm734_vm0, %v735_v6 }
   0x2   :  { %v633_v4 = vpack.c.bf16 %v22_v1, %v21_v0  ;;  %v24_v5 = vld [vmem:[%s973_s1 + $0x18] sm:$0xff]  ;;  %656 = vmatprep.subr.bf16.mxu1 %v733_v3  ;;  %559 = vmatprep.mubr.msk.f32.mxu1 %vm734_vm0, %v735_v6  ;;  %v25_v8 = vld [vmem:[%s973_s1 + $0x20] sm:$0xff]  ;;  %v26_v9 = vld [vmem:[%s973_s1 + $0x28] sm:$0xff] }
   0x3   :  { %v636_v7 = vpack.c.bf16 %v24_v5, %v23_v2  ;;  %v112_v10 = vld [vmem:[%s975_s3] sm:$0xff]  ;;  %v113_v11 = vld [vmem:[%s975_s3 + $0x8] sm:$0xff]  ;;  %v114_v12 = vld [vmem:[%s975_s3 + $0x10] sm:$0xff]  ;;  %v639_v14 = vpack.c.bf16 %v26_v9, %v25_v8 }
   0x4   :  { %634 = vmatpush3.bf16.msra.mxu0 %v633_v4  ;;  %v115_v13 = vld [vmem:[%s975_s3 + $0x18] sm:$0xff]  ;;  %v657_v15 = vpack.c.bf16 %v113_v11, %v112_v10  ;;  %v27_v16 = vld [vmem:[%s973_s1 + $0x30] sm:$0xff]  ;;  %v116_v19 = vld [vmem:[%s975_s3 + $0x20] sm:$0xff] }
   0x5   :  { %635 = vmatprep.subr.bf16.mxu0 %v733_v3  ;;  %v28_v17 = vld [vmem:[%s973_s1 + $0x38] sm:$0xff]  ;;  %v660_v18 = vpack.c.bf16 %v115_v13, %v114_v12  ;;  %v117_v20 = vld [vmem:[%s975_s3 + $0x28] sm:$0xff]  ;;  %v29_v22 = vld [vmem:[%s973_s1 + $0x40] sm:$0xff] }
   0x6   :  { %658 = vmatpush3.bf16.msra.mxu1 %v657_v15  ;;  %v642_v21 = vpack.c.bf16 %v28_v17, %v27_v16  ;;  %v30_v23 = vld [vmem:[%s973_s1 + $0x48] sm:$0xff]  ;;  %v663_v24 = vpack.c.bf16 %v117_v20, %v116_v19  ;;  %v118_v25 = vld [vmem:[%s975_s3 + $0x30] sm:$0xff]  ;;  %v119_v26 = vld [vmem:[%s975_s3 + $0x38] sm:$0xff] }
   0x7   :  { %659 = vmatprep.subr.bf16.mxu1 %v733_v3  ;;  %v645_v27 = vpack.c.bf16 %v30_v23, %v29_v22  ;;  %v31_v28 = vld [vmem:[%s973_s1 + $0x50] sm:$0xff]  ;;  %v32_v29 = vld [vmem:[%s973_s1 + $0x58] sm:$0xff]  ;;  %v666_v30 = vpack.c.bf16 %v119_v26, %v118_v25  ;;  %v120_v31 = vld [vmem:[%s975_s3 + $0x40] sm:$0xff] }
   0x8   :  { %637 = vmatpush3.bf16.msra.mxu0 %v636_v7  ;;  %v121_v32 = vld [vmem:[%s975_s3 + $0x48] sm:$0xff]  ;;  %v648_v33 = vpack.c.bf16 %v32_v29, %v31_v28  ;;  %v33_v34 = vld [vmem:[%s973_s1 + $0x60] sm:$0xff]  ;;  %v122_v37 = vld [vmem:[%s975_s3 + $0x50] sm:$0xff] }
   0x9   :  { %638 = vmatprep.subr.bf16.mxu0 %v733_v3  ;;  %v34_v35 = vld [vmem:[%s973_s1 + $0x68] sm:$0xff]  ;;  %v669_v36 = vpack.c.bf16 %v121_v32, %v120_v31  ;;  %v123_v38 = vld [vmem:[%s975_s3 + $0x58] sm:$0xff]  ;;  %v35_v40 = vld [vmem:[%s973_s1 + $0x70] sm:$0xff] }
   0xa   :  { %661 = vmatpush3.bf16.msra.mxu1 %v660_v18  ;;  %v651_v39 = vpack.c.bf16 %v34_v35, %v33_v34  ;;  %v36_v41 = vld [vmem:[%s973_s1 + $0x78] sm:$0xff]  ;;  %v672_v42 = vpack.c.bf16 %v123_v38, %v122_v37  ;;  %v124_v43 = vld [vmem:[%s975_s3 + $0x60] sm:$0xff]  ;;  %v125_v44 = vld [vmem:[%s975_s3 + $0x68] sm:$0xff] }
   0xb   :  { %662 = vmatprep.subr.bf16.mxu1 %v733_v3  ;;  %v654_v45 = vpack.c.bf16 %v36_v41, %v35_v40  ;;  %v675_v46 = vpack.c.bf16 %v125_v44, %v124_v43  ;;  %v878_v47 = vld [vmem:[%s972_s0] sm:$0xff]  ;;  %v126_v48 = vld [vmem:[%s975_s3 + $0x70] sm:$0xff]  ;;  %v127_v49 = vld [vmem:[%s975_s3 + $0x78] sm:$0xff] }
   0xc   :  { %640 = vmatpush3.bf16.msra.mxu0 %v639_v14  ;;  %v678_v50 = vpack.c.bf16 %v127_v49, %v126_v48  ;;  %v288_v51 = vld [vmem:[%s974_s2] sm:$0xff]  ;;  %v289_v52 = vld [vmem:[%s974_s2 + $0x8] sm:$0xff]  ;;  %v290_v58 = vld [vmem:[%s974_s2 + $0x10] sm:$0xff] }
   0xd   :  { %641 = vmatprep.subr.bf16.mxu0 %v733_v3  ;;  %v420_v53 = vld [vmem:[%s976_s4] ss:$0 sm:$0xff]  ;;  %v705_v55 = vpack.c.bf16 %v289_v52, %v288_v51  ;;  %v291_v59 = vld [vmem:[%s974_s2 + $0x18] sm:$0xff]  ;;  %v293_v63 = vld [vmem:[%s974_s2 + $0x28] sm:$0xff] }
   0xe   :  { %664 = vmatpush3.bf16.msra.mxu1 %v663_v24  ;;  %v708_v61 = vpack.c.bf16 %v291_v59, %v290_v58  ;;  %v292_v62 = vld [vmem:[%s974_s2 + $0x20] sm:$0xff]  ;;  %v294_v1 = vld [vmem:[%s974_s2 + $0x30] sm:$0xff]  ;;  %v295_v2 = vld [vmem:[%s974_s2 + $0x38] sm:$0xff] }
   0xf   :  { %665 = vmatprep.subr.bf16.mxu1 %v733_v3  ;;  %v711_v0 = vpack.c.bf16 %v293_v63, %v292_v62  ;;  %v714_v4 = vpack.c.bf16 %v295_v2, %v294_v1  ;;  %v296_v5 = vld [vmem:[%s974_s2 + $0x40] sm:$0xff]  ;;  %v298_v8 = vld [vmem:[%s974_s2 + $0x50] sm:$0xff]  ;;  %v299_v9 = vld [vmem:[%s974_s2 + $0x58] sm:$0xff] }
  0x10   :  { %643 = vmatpush3.bf16.msra.mxu0 %v642_v21  ;;  %v720_v10 = vpack.c.bf16 %v299_v9, %v298_v8  ;;  %v300_v11 = vld [vmem:[%s974_s2 + $0x60] sm:$0xff]  ;;  %v301_v12 = vld [vmem:[%s974_s2 + $0x68] sm:$0xff]  ;;  %v302_v14 = vld [vmem:[%s974_s2 + $0x70] sm:$0xff] }
  0x11   :  { %644 = vmatprep.subr.bf16.mxu0 %v733_v3  ;;  %v723_v13 = vpack.c.bf16 %v301_v12, %v300_v11  ;;  %v423_v31 = vld [vmem:[%s976_s4 + $0x1] ss:$0 sm:$0xff] }
  0x12   :  { %667 = vmatpush3.bf16.msra.mxu1 %v666_v30 }
  0x13   :  { %668 = vmatprep.subr.bf16.mxu1 %v733_v3 }
  0x14   :  { %646 = vmatpush3.bf16.msra.mxu0 %v645_v27 }
  0x15   :  { %647 = vmatprep.subr.bf16.mxu0 %v733_v3 }
  0x16   :  { %670 = vmatpush3.bf16.msra.mxu1 %v669_v36 }
  0x17   :  { %671 = vmatprep.subr.bf16.mxu1 %v733_v3 }
  0x18   :  { %649 = vmatpush3.bf16.msra.mxu0 %v648_v33 }
  0x19   :  { %650 = vmatprep.subr.bf16.mxu0 %v733_v3 }
  0x1a   :  { %673 = vmatpush3.bf16.msra.mxu1 %v672_v42 }
  0x1b   :  { %674 = vmatprep.subr.bf16.mxu1 %v733_v3 }
  0x1c   :  { %652 = vmatpush3.bf16.msra.mxu0 %v651_v39 }
  0x1d   :  { %653 = vmatprep.subr.bf16.mxu0 %v733_v3 }
  0x1e   :  { %676 = vmatpush3.bf16.msra.mxu1 %v675_v46 }
  0x1f   :  { %677 = vmatprep.subr.bf16.mxu1 %v733_v3 }
  0x20   :  { %655 = vmatpush3.bf16.msra.mxu0 %v654_v45 }
  0x21   :  { %680 = vmatprep.subr.bf16.mxu0 %v733_v3 }
  0x22   :  { %679 = vmatpush3.bf16.msra.mxu1 %v678_v50 }
  0x23   :  { %525 = vmatmul.mubr.f32.vlgmr.msra.gmra.mrb[0].mxu0 %v878_v47  ;;  %704 = vmatprep.subr.bf16.mxu1 %v733_v3 }
  0x24   :  { %682 = vmatpush3.bf16.msra.mxu0 %v657_v15  ;;  %594 = vmatprep.mubr.msk.f32.mxu0 %vm734_vm0, %v735_v6  ;;  %v303_v15 = vld [vmem:[%s974_s2 + $0x78] sm:$0xff] }
  0x25   :  { %683 = vmatprep.subr.bf16.mxu0 %v733_v3  ;;  %v726_v16 = vpack.c.bf16 %v303_v15, %v302_v14 }
  0x28   :  { %685 = vmatpush3.bf16.msra.mxu0 %v660_v18 }
  0x29   :  { %686 = vmatprep.subr.bf16.mxu0 %v733_v3 }
  0x2c   :  { %688 = vmatpush3.bf16.msra.mxu0 %v663_v24  ;;  %v421_v24 = vld [vmem:[%s976_s4 + $0x2] ss:$0 sm:$0xff] }
  0x2d   :  { %689 = vmatprep.subr.bf16.mxu0 %v733_v3 }
  0x30   :  { %691 = vmatpush3.bf16.msra.mxu0 %v666_v30 }
  0x31   :  { %692 = vmatprep.subr.bf16.mxu0 %v733_v3 }
  0x34   :  { %694 = vmatpush3.bf16.msra.mxu0 %v669_v36 }
  0x35   :  { %695 = vmatprep.subr.bf16.mxu0 %v733_v3 }
  0x38   :  { %697 = vmatpush3.bf16.msra.mxu0 %v672_v42 }
  0x39   :  { %698 = vmatprep.subr.bf16.mxu0 %v733_v3 }
  0x3c   :  { %700 = vmatpush3.bf16.msra.mxu0 %v675_v46 }
  0x3d   :  { %701 = vmatprep.subr.bf16.mxu0 %v733_v3 }
  0x40   :  { %703 = vmatpush3.bf16.msra.mxu0 %v678_v50 }
  0xf6   :  { %v108_v54 = vpop.f32.mrb[0].mxu0 }
  0xf7   :  { %v109_v56 = vadd.f32 %v420_v53, %v108_v54  ;;  %v526_v57 = vpop.f32.mrb[1].mxu0 }
  0xf9   :  { %v198_v60 = vmul.f32 %v109_v56, %v109_v56  ;;  %560 = vmatmul.mubr.f32.vlgmr.msra.gmra.mrb[0].mxu1 %v109_v56 }
  0xfa   :  { %706 = vmatpush3.bf16.msra.mxu1 %v705_v55  ;;  %629 = vmatprep.mubr.msk.f32.mxu1 %vm734_vm0, %v735_v6  ;;  %v297_v6 = vld [vmem:[%s974_s2 + $0x48] sm:$0xff] }
  0xfb   :  { %595 = vmatmul.mubr.f32.vlgmr.msra.gmra.mrb[2].mxu0 %v198_v60  ;;  %707 = vmatprep.subr.bf16.mxu1 %v733_v3  ;;  %v717_v7 = vpack.c.bf16 %v297_v6, %v296_v5 }
  0xfe   :  { %709 = vmatpush3.bf16.msra.mxu1 %v708_v61 }
  0xff   :  { %710 = vmatprep.subr.bf16.mxu1 %v733_v3 }
 0x102   :  { %712 = vmatpush3.bf16.msra.mxu1 %v711_v0 }
 0x103   :  { %713 = vmatprep.subr.bf16.mxu1 %v733_v3 }
 0x106   :  { %715 = vmatpush3.bf16.msra.mxu1 %v714_v4 }
 0x107   :  { %716 = vmatprep.subr.bf16.mxu1 %v733_v3 }
 0x10a   :  { %718 = vmatpush3.bf16.msra.mxu1 %v717_v7 }
 0x10b   :  { %719 = vmatprep.subr.bf16.mxu1 %v733_v3 }
 0x10e   :  { %721 = vmatpush3.bf16.msra.mxu1 %v720_v10 }
 0x10f   :  { %722 = vmatprep.subr.bf16.mxu1 %v733_v3 }
 0x112   :  { %724 = vmatpush3.bf16.msra.mxu1 %v723_v13 }
 0x113   :  { %725 = vmatprep.subr.bf16.mxu1 %v733_v3  ;;  %v422_v3 = vld [vmem:[%s976_s4 + $0x3] ss:$0 sm:$0xff] }
 0x116   :  { %727 = vmatpush3.bf16.msra.mxu1 %v726_v16 }
 0x1cc   :  { %v194_v17 = vpop.f32.mrb[0].mxu1 }
 0x1cd   :  { %v269_v18 = vmul.f32 %v194_v17, %v194_v17  ;;  %v561_v19 = vpop.f32.mrb[1].mxu1  ;;  %v279_v26 = vsub.f32 %v109_v56, %v194_v17 }
 0x1ce   :  { %v265_v20 = vpop.f32.mrb[2].mxu0 }
 0x1cf   :  { %v270_v21 = vsub.f32 %v265_v20, %v269_v18  ;;  %v596_v22 = vpop.f32.mrb[3].mxu0 }
 0x1d1   :  { %v272_v23 = vadd.f32 1e-05, %v270_v21 }
 0x1d3   :  { %731 = vrsqrt.f32 %v272_v23 }
 0x1dd   :  { %v732_v25 = vpop.eup %731 }
 0x1de   :  { %v278_v27 = vmul.f32 %v732_v25, %v421_v24 }
 0x1e0   :  { %v280_v28 = vmul.f32 %v279_v26, %v278_v27 }
 0x1e2   :  { %v286_v29 = vadd.f32 %v422_v3, %v280_v28 }
 0x1e4   :  { %v287_v30 = vmax.f32 %v286_v29, 0.0 }
 0x1e6   :  { %630 = vmatmul.mubr.f32.vlgmr.msra.gmra.mrb[2].mxu1 %v287_v30 }
 0x2b9   :  { %v375_v32 = vpop.f32.mrb[2].mxu1 }
 0x2ba   :  { %v376_v33 = vadd.f32 %v423_v31, %v375_v32  ;;  %v631_v34 = vpop.f32.mrb[3].mxu1 }
 0x2bc   :  { %v379_v35 = vadd.f32 %v376_v33, %v878_v47 }
 0x2be   :  { %380 = vst [vmem:[#allocation2] sm:$0xff] %v379_v35 }
 0x2c5   :  { %v398_v36 = vld [vmem:[#allocation2] sm:$0xf] }
 0x2c6   :  { %399 = vst [vmem:[%s977_s5] sm:$0xf] %v398_v36 }

</bundles_post_ra>
